<compile_context>
chip_gen: v7x
topology: tpu7x:2x2x1
jax: 0.10.0
libtpu: 0.0.40
codegen_flags: <defaults>
</compile_context>

<pallas_src>
import math
import functools

import jax
import jax.numpy as jnp
from jax import lax
from jax.experimental import pallas as pl
from jax.experimental.pallas import tpu as pltpu


# ------------------------------ config ---------------------------------------

class Config:
    img_size = 16
    patch_size = 4
    in_channels = 3
    hidden_size = 32
    num_heads = 4
    mlp_dim = 64
    num_layers = 2
    ln_eps = 1e-6


# Above the 16 MiB (v5e) / 32 MiB (v6e, v7x) scoped defaults, below every
# generation's physical VMEM.
_VMEM_LIMIT_BYTES = 48 * 1024 * 1024


# ------------------------------ helpers --------------------------------------

def _bf16(x):
    return x.astype(jnp.bfloat16)


def _layernorm(x, g, b, eps):
    mu = jnp.mean(x, axis=-1, keepdims=True)
    xc = x - mu
    var = jnp.mean(xc * xc, axis=-1, keepdims=True)
    return xc * lax.rsqrt(var + eps) * g + b


# ------------------------------ Pallas kernels -------------------------------

def _patch_embed_kernel(p_ref, w_ref, b_ref, pos_ref, o_ref):
    # p_ref: (n_patch, K) bf16 patches of one batch element; w_ref: (K, D) bf16.
    acc = jnp.dot(p_ref[...], w_ref[...], preferred_element_type=jnp.float32)
    o_ref[...] = (acc + b_ref[...] + pos_ref[...]).astype(o_ref.dtype)


def _ln_qkv_kernel(x_ref, g_ref, b_ref, w_ref, wb_ref, o_ref, *, eps):
    # fused attention_norm + QKV projection:  (TM, D) f32 -> (TM, 3D) bf16
    xn = _layernorm(x_ref[...].astype(jnp.float32), g_ref[...], b_ref[...], eps)
    acc = jnp.dot(_bf16(xn), w_ref[...], preferred_element_type=jnp.float32)
    o_ref[...] = (acc + wb_ref[...]).astype(o_ref.dtype)


def _attention_kernel(qkv_ref, o_ref, *, num_heads, scale):
    # qkv_ref: (S, 3D) bf16 row-layout for one batch element (no head transpose in
    # HBM). Per-head static slices; ctx written back in (S, D) row layout.
    S, three_d = qkv_ref.shape
    D = three_d // 3
    dh = D // num_heads
    qkv = qkv_ref[...]                                   # bf16
    ctx_heads = []
    for h in range(num_heads):
        qh = qkv[:, h * dh:(h + 1) * dh]
        kh = qkv[:, D + h * dh:D + (h + 1) * dh]
        vh = qkv[:, 2 * D + h * dh:2 * D + (h + 1) * dh]
        # Q K^T without an explicit transpose (contract the dh axis of both).
        s = lax.dot_general(qh, kh, (((1,), (1,)), ((), ())),
                            preferred_element_type=jnp.float32) * scale
        s = s - jnp.max(s, axis=-1, keepdims=True)
        p = jnp.exp(s)
        inv = pl.reciprocal(jnp.sum(p, axis=-1, keepdims=True), approx=True)
        p = p * inv
        ctx_heads.append(jnp.dot(_bf16(p), vh,
                                 preferred_element_type=jnp.float32))
    o_ref[...] = jnp.concatenate(ctx_heads, axis=-1).astype(o_ref.dtype)


def _proj_res_ln_fc1_kernel(ctx_ref, res_ref, wo_ref, bo_ref, g_ref, b_ref,
                            w1_ref, b1_ref, y_ref, z_ref, *, eps):
    # fused: out-proj + residual add + ffn_norm + FC1 + GELU
    att = jnp.dot(ctx_ref[...], wo_ref[...],
                  preferred_element_type=jnp.float32) + bo_ref[...]
    y = att + res_ref[...].astype(jnp.float32)           # post-attention residual
    y_ref[...] = y.astype(y_ref.dtype)                   # f32 residual stream
    yn = _layernorm(y, g_ref[...], b_ref[...], eps)
    h = jnp.dot(_bf16(yn), w1_ref[...],
                preferred_element_type=jnp.float32) + b1_ref[...]
    # TODO(synk): PyTorch F.gelu defaults to exact erf GELU; tanh approximation is
    # used here (|delta| <~ 1e-3) for guaranteed Mosaic lowering.
    z_ref[...] = jax.nn.gelu(h, approximate=True).astype(z_ref.dtype)


def _fc2_res_kernel(z_ref, y_ref, w2_ref, b2_ref, o_ref):
    # fused: FC2 + residual add
    acc = jnp.dot(z_ref[...], w2_ref[...], preferred_element_type=jnp.float32)
    o_ref[...] = (acc + b2_ref[...] + y_ref[...].astype(jnp.float32)
                  ).astype(o_ref.dtype)


def _ln_kernel(x_ref, g_ref, b_ref, o_ref, *, eps):
    o_ref[...] = _layernorm(x_ref[...].astype(jnp.float32),
                            g_ref[...], b_ref[...], eps).astype(o_ref.dtype)


# ------------------------------ kernel wrappers -------------------------------

def _choose_row_tiling(m):
    """Return (padded_M, row_tile).

    Row tile is a multiple of 8 (16 for bf16 packing), capped so that:
      * the grid has >= 2 steps whenever m > 8 (v7x has 2 TensorCores; a 1-step
        'parallel' grid uses only one, and >=2 steps enables pipelining),
      * awkward M values (e.g. B*197) are padded with a few rows instead of
        collapsing to 8-row tiles (thousands of grid steps / tiny DMAs).
    """
    if m >= 4096:
        tm = 512
    elif m >= 1024:
        tm = 256
    else:
        tm = min(256, max(8, pl.next_power_of_2(max(m // 2, 8))))
    m_pad = tm * pl.cdiv(m, tm)
    return m_pad, tm


def _call_rowwise(kernel, row_inputs, const_inputs, outs):
    """Run `kernel` over row-tiles of M (batch folded into the GEMM M dim).

    row_inputs  : list of (M, *) arrays tiled along rows.
    const_inputs: weights / biases / LN params; constant index_map keeps them
                  VMEM-resident across grid steps (no re-DMA).
    outs        : list of (feature_dim, dtype); outputs are (M, d).
    """
    M = row_inputs[0].shape[0]
    M_pad, tm = _choose_row_tiling(M)
    if M_pad != M:
        row_inputs = [jnp.pad(a, ((0, M_pad - M), (0, 0))) for a in row_inputs]
    grid = (M_pad // tm,)
    in_specs = [pl.BlockSpec((tm, a.shape[1]), lambda i: (i, 0))
                for a in row_inputs]
    in_specs += [pl.BlockSpec(c.shape, lambda i, n=c.ndim: (0,) * n)
                 for c in const_inputs]
    out_specs = [pl.BlockSpec((tm, d), lambda i: (i, 0)) for d, _ in outs]
    out_shape = [jax.ShapeDtypeStruct((M_pad, d), dt) for d, dt in outs]
    single = len(outs) == 1
    res = pl.pallas_call(
        kernel,
        grid=grid,
        in_specs=in_specs,
        out_specs=out_specs[0] if single else out_specs,
        out_shape=out_shape[0] if single else out_shape,
        compiler_params=pltpu.CompilerParams(
            dimension_semantics=("parallel",),
            vmem_limit_bytes=_VMEM_LIMIT_BYTES),
    )(*row_inputs, *const_inputs)
    if single:
        res = (res,)
    if M_pad != M:
        res = tuple(r[:M] for r in res)
    return res[0] if single else res


def patch_embed(x_nchw, w2d_bf16, bias, pos):
    """Conv2d(kernel=stride=P) + flatten + transpose + position embeddings."""
    B, Cin, Himg, Wimg = x_nchw.shape
    K, D = w2d_bf16.shape
    P = int(round(math.sqrt(K // Cin)))
    gh, gw = Himg // P, Wimg // P
    n_patch = gh * gw
    # glue: strided conv == non-overlapping patch extraction, (c, dy, dx) order
    patches = x_nchw.reshape(B, Cin, gh, P, gw, P)
    patches = patches.transpose(0, 2, 4, 1, 3, 5).reshape(B, n_patch, K)
    patches = patches.astype(jnp.bfloat16)          # halve patch DMA into kernel
    out = pl.pallas_call(
        _patch_embed_kernel,
        grid=(B,),
        in_specs=[
            pl.BlockSpec((None, n_patch, K), lambda b: (b, 0, 0)),
            pl.BlockSpec((K, D), lambda b: (0, 0)),
            pl.BlockSpec((1, D), lambda b: (0, 0)),
            pl.BlockSpec((n_patch, D), lambda b: (0, 0)),
        ],
        out_specs=pl.BlockSpec((None, n_patch, D), lambda b: (b, 0, 0)),
        out_shape=jax.ShapeDtypeStruct((B, n_patch, D), jnp.float32),
        compiler_params=pltpu.CompilerParams(
            dimension_semantics=("parallel",),
            vmem_limit_bytes=_VMEM_LIMIT_BYTES),
    )(patches, w2d_bf16, bias.reshape(1, D), pos)
    return out, gh, gw


def attention_core(qkv_bsd, num_heads, scale):
    B, S, three_d = qkv_bsd.shape
    D = three_d // 3
    return pl.pallas_call(
        functools.partial(_attention_kernel, num_heads=num_heads, scale=scale),
        grid=(B,),
        in_specs=[pl.BlockSpec((None, S, three_d), lambda b: (b, 0, 0))],
        out_specs=pl.BlockSpec((None, S, D), lambda b: (b, 0, 0)),
        out_shape=jax.ShapeDtypeStruct((B, S, D), jnp.bfloat16),
        compiler_params=pltpu.CompilerParams(
            dimension_semantics=("parallel",),
            vmem_limit_bytes=_VMEM_LIMIT_BYTES),
    )(qkv_bsd)


# ------------------------------ forward pass ----------------------------------

def transformer_forward(params, cfg, x_nchw):
    """Pallas implementation of Transformer.forward (eval mode).

    Returns (encoded, attn_weights, features, bfr_flat_size_2, bfr_flat_size_3),
    matching the PyTorch module's return tuple (vis=False -> attn_weights == []).
    """
    B = x_nchw.shape[0]
    D, H = cfg.hidden_size, cfg.num_heads
    dh = D // H
    eps = cfg.ln_eps

    # ---- Embeddings (non-hybrid): patch conv + bias + position embeddings ----
    tokens, gh, gw = patch_embed(x_nchw, _bf16(params["patch_w"]),
                                 params["patch_b"], params["pos"])
    S = gh * gw
    x = tokens.reshape(B * S, D)                     # f32 residual stream

    # ---- Encoder blocks ----
    for lp in params["layers"]:
        # K1: attention_norm + fused QKV projection -> (B*S, 3D) bf16
        qkv = _call_rowwise(
            functools.partial(_ln_qkv_kernel, eps=eps),
            [x], [lp["ln1_g"], lp["ln1_b"], _bf16(lp["wqkv"]), lp["bqkv"]],
            [(3 * D, jnp.bfloat16)])

        # K2: multi-head attention core, row layout in / row layout out
        # (reshapes below are contiguous -> no HBM transpose between kernels).
        ctx = attention_core(qkv.reshape(B, S, 3 * D), H, 1.0 / math.sqrt(dh))
        ctx = ctx.reshape(B * S, D)

        # K3: out-proj + residual + ffn_norm + FC1 + GELU
        y, z = _call_rowwise(
            functools.partial(_proj_res_ln_fc1_kernel, eps=eps),
            [ctx, x],
            [_bf16(lp["wo"]), lp["bo"], lp["ln2_g"], lp["ln2_b"],
             _bf16(lp["w1"]), lp["b1"]],
            [(D, jnp.float32), (cfg.mlp_dim, jnp.bfloat16)])

        # K4: FC2 + residual
        x = _call_rowwise(_fc2_res_kernel, [z, y],
                          [_bf16(lp["w2"]), lp["b2"]], [(D, jnp.float32)])

    # ---- encoder_norm ----
    encoded = _call_rowwise(functools.partial(_ln_kernel, eps=eps),
                            [x], [params["lnf_g"], params["lnf_b"]],
                            [(D, jnp.float32)])
    encoded = encoded.reshape(B, S, D)

    attn_weights = []        # vis=False
    features = None          # non-hybrid path
    return encoded, attn_weights, features, gh, gw


# ------------------------------ pure-JAX reference -----------------------------

def _ln_ref(x, g, b, eps):
    mu = jnp.mean(x, axis=-1, keepdims=True)
    var = jnp.mean((x - mu) ** 2, axis=-1, keepdims=True)
    return (x - mu) / jnp.sqrt(var + eps) * g + b


def transformer_forward_ref(params, cfg, x_nchw):
    B, Cin, Himg, Wimg = x_nchw.shape
    P = cfg.patch_size
    gh, gw = Himg // P, Wimg // P
    D, H = cfg.hidden_size, cfg.num_heads
    dh = D // H
    S = gh * gw
    eps = cfg.ln_eps
    hp = lax.Precision.HIGHEST

    patches = x_nchw.reshape(B, Cin, gh, P, gw, P).transpose(0, 2, 4, 1, 3, 5)
    patches = patches.reshape(B, S, Cin * P * P)
    x = jnp.matmul(patches, params["patch_w"], precision=hp) \
        + params["patch_b"] + params["pos"]

    for lp in params["layers"]:
        hres = x
        xn = _ln_ref(x, lp["ln1_g"], lp["ln1_b"], eps)
        qkv = jnp.matmul(xn, lp["wqkv"], precision=hp) + lp["bqkv"]
        q, k, v = jnp.split(qkv, 3, axis=-1)
        heads = lambda t: t.reshape(B, S, H, dh).transpose(0, 2, 1, 3)
        q, k, v = heads(q), heads(k), heads(v)
        s = jnp.einsum("bhqd,bhkd->bhqk", q, k, precision=hp) / math.sqrt(dh)
        p = jax.nn.softmax(s, axis=-1)
        ctx = jnp.einsum("bhqk,bhkd->bhqd", p, v, precision=hp)
        ctx = ctx.transpose(0, 2, 1, 3).reshape(B, S, D)
        att = jnp.matmul(ctx, lp["wo"], precision=hp) + lp["bo"]
        x = att + hres
        hres = x
        xn = _ln_ref(x, lp["ln2_g"], lp["ln2_b"], eps)
        z = jax.nn.gelu(jnp.matmul(xn, lp["w1"], precision=hp) + lp["b1"],
                        approximate=True)
        x = jnp.matmul(z, lp["w2"], precision=hp) + lp["b2"] + hres

    return _ln_ref(x, params["lnf_g"], params["lnf_b"], eps)


# ------------------------------ params ----------------------------------------

def init_params(key, cfg):
    D = cfg.hidden_size
    K = cfg.in_channels * cfg.patch_size ** 2
    S = (cfg.img_size // cfg.patch_size) ** 2
    mlp = cfg.mlp_dim
    keys = iter(jax.random.split(key, 8 + 12 * cfg.num_layers))

    def nrm(shape, s=0.05):
        return s * jax.random.normal(next(keys), shape, jnp.float32)

    params = {
        "patch_w": nrm((K, D)),
        "patch_b": nrm((D,)),
        "pos": nrm((S, D)),
        "lnf_g": 1.0 + nrm((1, D)),
        "lnf_b": nrm((1, D)),
        "layers": [],
    }
    for _ in range(cfg.num_layers):
        params["layers"].append({
            "ln1_g": 1.0 + nrm((1, D)), "ln1_b": nrm((1, D)),
            "wqkv": nrm((D, 3 * D), 0.1), "bqkv": nrm((1, 3 * D)),
            "wo": nrm((D, D), 0.1), "bo": nrm((1, D)),
            "ln2_g": 1.0 + nrm((1, D)), "ln2_b": nrm((1, D)),
            "w1": nrm((D, mlp), 0.1), "b1": nrm((1, mlp)),
            "w2": nrm((mlp, D), 0.1), "b2": nrm((1, D)),
        })
    return params


# ------------------------------ main -------------------------------------------

if __name__ == "__main__":
    cfg = Config()
    B = 2

    key = jax.random.PRNGKey(0)
    kx, kp = jax.random.split(key)
    x = jax.random.normal(kx, (B, cfg.in_channels, cfg.img_size, cfg.img_size),
                          jnp.float32)
    params = init_params(kp, cfg)

    encoded, attn_w, features, h2, w2 = transformer_forward(params, cfg, x)
    encoded = jax.block_until_ready(encoded)

    ref = jax.block_until_ready(transformer_forward_ref(params, cfg, x))

    n_patch = (cfg.img_size // cfg.patch_size) ** 2
    assert encoded.shape == (B, n_patch, cfg.hidden_size), encoded.shape
    assert h2 == cfg.img_size // cfg.patch_size
    assert w2 == cfg.img_size // cfg.patch_size
    assert attn_w == [] and features is None

    # Tolerance accounts for bf16 MXU operands / bf16 inter-kernel activations
    # (f32 accumulation and f32 residual stream keep the error well inside this).
    err = float(jnp.max(jnp.abs(encoded - ref)) / (jnp.max(jnp.abs(ref)) + 1e-6))
    assert err < 4e-2, f"mismatch vs reference, rel-max-err={err}"

    print("KERNEL_OK")
</pallas_src>

<mosaic_0001>
module attributes {stable_mosaic.version = 11 : i64} {
  func.func @_patch_embed_kernel(%arg0: i32, %arg1: memref<1x16x48xbf16, #tpu.memory_space<vmem>>, %arg2: memref<48x32xbf16, #tpu.memory_space<vmem>>, %arg3: memref<1x32xf32, #tpu.memory_space<vmem>>, %arg4: memref<16x32xf32, #tpu.memory_space<vmem>>, %arg5: memref<1x16x32xf32, #tpu.memory_space<vmem>>) attributes {dimension_semantics = [#tpu.dimension_semantics<parallel>], iteration_bounds = array<i64: 2>, scalar_prefetch = 0 : i64, scratch_operands = 0 : i64, tpu.core_type = #tpu.core_type<tc>, window_params = [{transform_indices = @transform_0, window_bounds = array<i64: 1, 16, 48>}, {pipeline_mode = #tpu.pipeline_mode<synchronous>, transform_indices = @transform_1, window_bounds = array<i64: 48, 32>}, {pipeline_mode = #tpu.pipeline_mode<synchronous>, transform_indices = @transform_2, window_bounds = array<i64: 1, 32>}, {pipeline_mode = #tpu.pipeline_mode<synchronous>, transform_indices = @transform_3, window_bounds = array<i64: 16, 32>}, {transform_indices = @transform_4, window_bounds = array<i64: 1, 16, 32>}]} {
    %c0 = arith.constant 0 : index
    %c0_0 = arith.constant 0 : index
    %c0_1 = arith.constant 0 : index
    %0 = vector.load %arg1[%c0, %c0_0, %c0_1] : memref<1x16x48xbf16, #tpu.memory_space<vmem>>, vector<1x16x48xbf16>
    %1 = vector.shape_cast %0 : vector<1x16x48xbf16> to vector<16x48xbf16>
    %c0_2 = arith.constant 0 : index
    %c0_3 = arith.constant 0 : index
    %2 = vector.load %arg2[%c0_2, %c0_3] : memref<48x32xbf16, #tpu.memory_space<vmem>>, vector<48x32xbf16>
    %cst = arith.constant dense<0.000000e+00> : vector<16x32xf32>
    %3 = tpu.matmul %1, %2, %cst {dimension_numbers = #tpu.dot_dimension_numbers<[1], [0], [0], [1], [0, 0, 1, 1], [], []>} : vector<16x48xbf16>, vector<48x32xbf16>, vector<16x32xf32> -> vector<16x32xf32>
    %c0_4 = arith.constant 0 : index
    %c0_5 = arith.constant 0 : index
    %4 = vector.load %arg3[%c0_4, %c0_5] : memref<1x32xf32, #tpu.memory_space<vmem>>, vector<1x32xf32>
    %5 = vector.broadcast %4 : vector<1x32xf32> to vector<16x32xf32>
    %6 = arith.addf %3, %5 : vector<16x32xf32>
    %c0_6 = arith.constant 0 : index
    %c0_7 = arith.constant 0 : index
    %7 = vector.load %arg4[%c0_6, %c0_7] : memref<16x32xf32, #tpu.memory_space<vmem>>, vector<16x32xf32>
    %8 = arith.addf %6, %7 : vector<16x32xf32>
    %c0_8 = arith.constant 0 : index
    %c0_9 = arith.constant 0 : index
    %c0_10 = arith.constant 0 : index
    %9 = vector.load %arg5[%c0_8, %c0_9, %c0_10] : memref<1x16x32xf32, #tpu.memory_space<vmem>>, vector<1x16x32xf32>
    %10 = vector.shape_cast %9 : vector<1x16x32xf32> to vector<16x32xf32>
    %11 = vector.shape_cast %8 : vector<16x32xf32> to vector<1x16x32xf32>
    tpu.vector_store %arg5[%c0_8, %c0_9, %c0_10], %11 {strides = array<i32>} : memref<1x16x32xf32, #tpu.memory_space<vmem>>, vector<1x16x32xf32>,
    return
  }
  func.func @transform_0(%arg0: i32) -> (i32, i32, i32) {
    %c0_i32 = arith.constant 0 : i32
    %c0_i32_0 = arith.constant 0 : i32
    %c0_i32_1 = arith.constant 0 : i32
    return %arg0, %c0_i32, %c0_i32_0 : i32, i32, i32
  }
  func.func @transform_1(%arg0: i32) -> (i32, i32) {
    %c0_i32 = arith.constant 0 : i32
    %c0_i32_0 = arith.constant 0 : i32
    %c0_i32_1 = arith.constant 0 : i32
    return %c0_i32, %c0_i32_0 : i32, i32
  }
  func.func @transform_2(%arg0: i32) -> (i32, i32) {
    %c0_i32 = arith.constant 0 : i32
    %c0_i32_0 = arith.constant 0 : i32
    %c0_i32_1 = arith.constant 0 : i32
    return %c0_i32, %c0_i32_0 : i32, i32
  }
  func.func @transform_3(%arg0: i32) -> (i32, i32) {
    %c0_i32 = arith.constant 0 : i32
    %c0_i32_0 = arith.constant 0 : i32
    %c0_i32_1 = arith.constant 0 : i32
    return %c0_i32, %c0_i32_0 : i32, i32
  }
  func.func @transform_4(%arg0: i32) -> (i32, i32, i32) {
    %c0_i32 = arith.constant 0 : i32
    %c0_i32_0 = arith.constant 0 : i32
    %c0_i32_1 = arith.constant 0 : i32
    return %arg0, %c0_i32, %c0_i32_0 : i32, i32, i32
  }
}

</mosaic_0001>

<bundles_post_ra>
// kernel: tpu_custom_call.1
= control target key start
LH: loop header
LB: loop body
LE: loop exit
PB: predicated region body
PF: predicated region fallthrough
CT: control target
= control target key end

     0   :  { %9 = vsyncpa [#allocation3], 0  ;;  %s659_s0 = inlined_call_operand.vmem [shape: bf16[2,16,48], index: 0, kind: input, shape index: {}]   ;;  %s660_s1 = inlined_call_operand.vmem [shape: bf16[48,32], index: 1, kind: input, shape index: {}]   ;;  %s661_s2 = inlined_call_operand.vmem [shape: f32[1,32], index: 2, kind: input, shape index: {}]   ;;  %s662_s3 = inlined_call_operand.vmem [shape: f32[16,32], index: 3, kind: input, shape index: {}]   ;;  %s663_s4 = inlined_call_operand.hbm [shape: f32[2,16,32], index: 4, kind: output, shape index: {}]  }
   0x1   :  { %11 = vsyncpa [#allocation3 + $0x1], 0  ;;  %s538_s15 = smov 0   ;;  %s540_s16 = smov 0  }
   0x2   :  { %s542_s17 = smov 0   ;;  %s544_s18 = smov 0  }
   0x3 LB: > { %s559_s19 = sadd.s32 4294967295, %s506_s18   ;;  %s363_s20 = sadd.s32 4294967294, %s506_s18   ;;  %s506_s18 = sphi %s544_s18, %s669_s18   ;;  %s502_s17 = sphi %s542_s17, %s668_s17   ;;  %s498_s16 = sphi %s540_s16, %s667_s16   ;;  %s494_s15 = sphi %s538_s15, %s666_s15  }
   0x4   : > { %s563_s21 = sadd.s32 1, %s506_s18   ;;  %s113_s22 = sadd.s32 1, %s502_s17 }
   0x5   : > { %s110_s23 = ssub.s32 %s506_s18, %s563_s21  ;;  %p123_p0 = scmp.ne.s32.totalorder %s502_s17, %s498_s16 }
   0x6   : > { %p111_p1 = scmp.eq.s32.totalorder %s110_s23, 0  ;;  %p124_p2 = scmp.eq.s32.totalorder %s559_s19, 1 }
   0x7   : > { %p129_p3 = scmp.ne.s32.totalorder %s498_s16, %s494_s15  ;;  %p130_p4 = scmp.eq.s32.totalorder %s363_s20, 1 }
   0x8   : > { %s574_s24 = scalar_select %p111_p1, %s502_s17, %s113_s22  }
   0x9   : > { %p576_p5 = por %p124_p2, %p123_p0  ;;  %p580_p6 = por %p130_p4, %p129_p3 }
   0xa   : > { %p366_p7 = scmp.ge.s32.totalorder %s506_s18, 1  ;;  %p165_p8 = scmp.lt.s32.totalorder %s506_s18, 3 }
   0xc   : > { %p166_p9 = pnand %p366_p7, %p165_p8 }
   0xd   : > { %v440_v0 = vld [vmem:[%s660_s1] sm:$0xff] (!%p166_p9)   ;;  %v508_v1 = vmov (!%p166_p9), 0.0   ;;  %v441_v2 = vld [vmem:[%s660_s1 + $0x8] sm:$0xff] (!%p166_p9)   ;;  %vm509_vm0 = vmmov (!%p166_p9), 0   ;;  %p191_p10 = scmp.lt.s32.totalorder (!%p166_p9), %s559_s19, 1  ;;  %v442_v3 = vld [vmem:[%s660_s1 + $0x10] sm:$0xff] (!%p166_p9)  }
   0xe   : > { %169 = sbr.rel (%p166_p9) target bundleno = 259 (0x103), region = 36  ;;  %387 = vmatprep.subr.bf16.mxu0 (!%p166_p9), %v508_v1  ;;  %393 = vmatprep.mubr.msk.bf16.mxu0 (!%p166_p9), %vm509_vm0, %v508_v1  ;;  %vm235_vm1 = vcmask (!%p166_p9), 392192   ;;  %s188_s12 = sand.u32 (!%p166_p9), 1, %s498_s16   ;;  %v370_v5 = vld [vmem:[%s661_s2] ss:$0 sm:$0xff] (!%p166_p9)  ;;  %vm284_vm2 = vcmask (!%p166_p9), 261120  }
   0xf   : > { %388 = vmatpush3.bf16.msra.mxu0 (!%p166_p9), %v440_v0  ;;  %s367_s13 = sshll.u32 (!%p166_p9), %s188_s12, 4  ;;  %v280_v7 = vld [vmem:[%s662_s3] sm:$0xff] (!%p166_p9)  ;;  %s382_s29 = sshll.u32 (!%p166_p9), %s559_s19, 8  ;;  %v281_v11 = vld [vmem:[%s662_s3 + $0x8] sm:$0xff] (!%p166_p9) }
  0x10   : > { %389 = vmatprep.subr.bf16.mxu0 (!%p166_p9), %v508_v1  ;;  %s190_s27 = scalar_lea.vmem (!%p166_p9), [#allocation2], %s367_s13  ;;  %s510_s10 = smov (!%p166_p9), [#allocation2]  }
  0x11   : > { %s301_s28 = sshll.u32 (!%p166_p9), %s190_s27, 4  ;;  %s616_s28 = int_to_ptr.vmem [resolvable:$true] %s301_s28 }
  0x12   : > { %s444_s9 = scalar_lea.vmem (!%p166_p9), %s616_s28, 256 }
  0x13   : > { %390 = vmatpush3.bf16.msra.mxu0 (!%p166_p9), %v441_v2  ;;  %p445_p11 = scmp.ne.s32.totalorder (!%p166_p9), %s616_s28, %s444_s9 }
  0x14   : > { %391 = vmatprep.subr.bf16.mxu0 (!%p166_p9), %v508_v1 }
  0x15   : > { %s192_s5 = scalar_select %p191_p10, %s559_s19, 1 }
  0x16   : > { %s618_s19 = scalar_lea.sflag [#allocation3], %s188_s12  ;;  %p446_p12 = pnand %p445_p11, %p576_p5 }
  0x17   : > { %s381_s8 = sshll.u32 %s192_s5, 3  ;;  %392 = vmatpush3.bf16.msra.mxu0 %v442_v3 }
  0x18   : > { %s195_s11 = scalar_lea.vmem %s659_s0, %s381_s8  ;;  %s614_s8 = scalar_lea.hbm %s663_s4, %s382_s29 }
  0x19   : > { %v443_v4 = vld [vmem:[%s195_s11] sm:$0xff]   ;;  %p447_p13 = pneg %p446_p12  ;;  %s448_s11 = sshll.u32 %s510_s10, 4  ;;  %s449_s11 = int_to_ptr.vmem [resolvable:$false] %s448_s11 }
  0x1a   : > { %394 = vmatmul.mubr.msk.bf16.vlgmr.msra.gmra.mrb[0].mxu0 %vm235_vm1, %v443_v4  ;;  %s450_s13 = scalar_lea.vmem %s449_s11, 512  ;;  %p451_p0 = scmp.lt.s32.totalorder %s616_s28, %s449_s11 }
  0x1b   : > { %p452_p1 = scmp.lt.s32.totalorder %s450_s13, %s444_s9 }
  0x1d   : > { %p453_p2 = por %p452_p1, %p451_p0 }
  0x1f   : > { %p454_p3 = pnand %p453_p2, %p447_p13 }
  0xed   : > { %v273_v6 = vpop.f32.mrb[0].mxu0 }
  0xee   : > { %v274_v8 = vadd.f32 %v370_v5, %v273_v6  ;;  %v395_v9 = vpop.f32.mrb[1].mxu0 }
  0xef   : > { %v276_v10 = vpop.f32.mrb[2].mxu0 }
  0xf0   : > { %v282_v12 = vadd.f32 %v280_v7, %v274_v8  ;;  %v277_v13 = vadd.f32 %v370_v5, %v276_v10  ;;  %v396_v14 = vpop.f32.mrb[3].mxu0 }
  0xf2   : > { %285 = vst.msk [vmem:[%s190_s27] sm:$0xff] %vm284_vm2, %v282_v12  ;;  %v283_v15 = vadd.f32 %v281_v11, %v277_v13 }
  0xf4   : > { %286 = vst.msk [vmem:[%s190_s27 + $0x8] sm:$0xff] %vm284_vm2, %v283_v15 }
  0xf5   : > { %457 = shalt.err (!%p454_p3)
}
  0xf6   : > { %s458_s12 = scalar_lea.hbm %s614_s8, 256  ;;  %s462_s22 = scalar_lea.hbm %s663_s4, 512 }
  0xf7   : > { %p459_p4 = scmp.ne.s32.totalorder %s614_s8, %s458_s12  ;;  %p463_p9 = scmp.lt.u32.totalorder %s614_s8, %s663_s4 }
  0xf8   : > { %p464_p10 = scmp.lt.u32.totalorder %s462_s22, %s458_s12  ;;  %p466_p12 = scmp.lt.u32.totalorder %s458_s12, %s614_s8 }
  0xf9   : > { %p460_p7 = pnand %p459_p4, %p576_p5 }
  0xfa   : > { %p465_p11 = por %p464_p10, %p463_p9 }
  0xfb   : > { %p461_p8 = pneg %p460_p7 }
  0xfc   : > { %p467_p13 = por %p466_p12, %p465_p11 }
  0xfe   : > { %p468_p0 = pnand %p467_p13, %p461_p8 }
 0x100   : > { %471 = shalt.err (!%p468_p0)
}
 0x101   : > { %s511_s29 = smov 128   ;;  %s512_s30 = smov 8  }
 0x102   : > { %397 = dma.vmem_to_hbm [thread:$0]  (%p576_p5), %s616_s28, 256, %s614_s8, %s618_s19, %s511_s29, %s511_s29, %s512_s30  }
 0x103 PF: > { %p403_p1 = scmp.ge.s32.totalorder %s506_s18, 2  ;;  %s316_s5 = sand.u32 1, %s494_s15  }
 0x104   : > { %s317_s6 = scalar_lea.sflag [#allocation3], %s316_s5 }
 0x105   : > { %p400_p2 = pnand %p403_p1, %p580_p6 }
 0x107   : > { %489 = dma.done.wait (!%p400_p2), %s317_s6, 256  }
 0x108   : > { %491 = vsyncadd (!%p400_p2), %s317_s6, 4294967040  ;;  %p14_p3 = scmp.ge.s32.totalorder %s563_s21, 4   ;;  %s666_s15 = smov %s498_s16 }
 0x109   : > { %s667_s16 = smov %s502_s17  ;;  %s668_s17 = smov %s574_s24 }
 0x10a   : > { %s669_s18 = smov %s563_s21  ;;  %16 = sbr.rel (!%p14_p3) target bundleno = 3 (0x3), region = 71 }
 0x111   :  { %322 = vsyncpa [#allocation3], 1 }
 0x112   :  { %324 = vsyncpa [#allocation3 + $0x1], 1 }

</bundles_post_ra>
